<compile_context>
chip_gen: v7x
topology: tpu7x:2x2x1
jax: 0.10.0
libtpu: 0.0.40
codegen_flags: <defaults>
</compile_context>

<pallas_src>
import math

import jax
import jax.numpy as jnp
from jax.experimental import pallas as pl
from jax.experimental.pallas import tpu as pltpu


def _round_up(x, m):
    return (x + m - 1) // m * m


def _state_predictor_kernel(state_ref, action_ref,
                            w1s_ref, w1a_ref, b1_ref,
                            w2_ref, b2_ref,
                            w3_ref, b3_ref,
                            o_ref):
    """One batch tile of the full MLP.

    state_ref : [TB, state_dim]   f32 (cast to bf16 for the MXU)
    action_ref: [TB, action_dim]  f32
    w1s/w1a   : [state_dim, H] / [action_dim, H] bf16 (row-split W1 -> fused cat)
    w2        : [H, H] bf16;  w3: [H, state_dim] bf16 (output dim UNPADDED)
    b1,b2     : [1, H] f32;   b3: [1, state_dim] f32
    o_ref     : [TB, state_dim] f32 (unpadded, masked vst but 8x fewer bytes)
    """
    s = state_ref[...].astype(jnp.bfloat16)
    a = action_ref[...].astype(jnp.bfloat16)

    # layer1 (torch.cat fused via split weights) + bias + ReLU (f32 elementwise)
    h1 = (jnp.dot(s, w1s_ref[...], preferred_element_type=jnp.float32)
          + jnp.dot(a, w1a_ref[...], preferred_element_type=jnp.float32)
          + b1_ref[...])
    h1 = jnp.maximum(h1, 0.0).astype(jnp.bfloat16)

    # layer2 + ReLU
    h2 = jnp.dot(h1, w2_ref[...], preferred_element_type=jnp.float32) + b2_ref[...]
    h2 = jnp.maximum(h2, 0.0).astype(jnp.bfloat16)

    # layer3 (no activation), f32 output
    out = jnp.dot(h2, w3_ref[...], preferred_element_type=jnp.float32) + b3_ref[...]
    o_ref[...] = out.astype(o_ref.dtype)


def init_params(key, state_dim, action_dim, hidden_dim=128):
    """nn.Linear-style U(-1/sqrt(fan_in), 1/sqrt(fan_in)) init.

    Weights stored [in, out]; biases [1, out]; all f32 (math layout).
    """
    dims = [(state_dim + action_dim, hidden_dim),
            (hidden_dim, hidden_dim),
            (hidden_dim, state_dim)]
    params = []
    for i, (fan_in, fan_out) in enumerate(dims):
        kw, kb = jax.random.split(jax.random.fold_in(key, i))
        bound = 1.0 / math.sqrt(fan_in)
        w = jax.random.uniform(kw, (fan_in, fan_out), jnp.float32, -bound, bound)
        b = jax.random.uniform(kb, (1, fan_out), jnp.float32, -bound, bound)
        params.extend([w, b])
    return tuple(params)


def prepare_params(params, state_dim, action_dim):
    """Convert math-layout params into the kernel layout (one-time, host side).

    - split W1 row-wise into state / action halves (fuses torch.cat)
    - zero-pad the HIDDEN dim to a multiple of 128 (exact: padded hidden units
      get 0 bias -> ReLU -> 0 -> feed zero weight rows)
    - keep the OUTPUT dim unpadded (lets the kernel store only useful bytes)
    - cast weights to bf16 for the MXU; keep biases f32.
    """
    w1, b1, w2, b2, w3, b3 = params
    hidden = w1.shape[1]
    H = _round_up(hidden, 128)

    def pad2(x, rows, cols):
        return jnp.pad(x, ((0, rows - x.shape[0]), (0, cols - x.shape[1])))

    w1s = pad2(w1[:state_dim, :], state_dim, H).astype(jnp.bfloat16)
    w1a = pad2(w1[state_dim:, :], action_dim, H).astype(jnp.bfloat16)
    b1p = pad2(b1, 1, H)
    w2p = pad2(w2, H, H).astype(jnp.bfloat16)
    b2p = pad2(b2, 1, H)
    w3p = pad2(w3, H, w3.shape[1]).astype(jnp.bfloat16)   # out dim NOT padded
    b3p = b3
    return (w1s, w1a, b1p, w2p, b2p, w3p, b3p)


def state_predictor_forward(state, action, kparams):
    """state: [B, state_dim], action: [B, action_dim] -> [B, state_dim]."""
    w1s, w1a, b1, w2, b2, w3, b3 = kparams
    B, state_dim = state.shape
    action_dim = action.shape[1]
    H = w2.shape[0]
    out_dim = w3.shape[1]          # == state_dim, unpadded

    # Big batch tile to amortize ~0.35 us/step overhead, but capped so that
    # large B still yields >= 4 grid steps (lets v7x shard across its 2 TCs).
    TB = min(2048, max(8, _round_up(pl.cdiv(B, 4), 8)))
    n_blocks = pl.cdiv(B, TB)      # ragged last block masked by Pallas

    def resident(shape):
        # Same block index every grid step -> stays VMEM-resident (no re-DMA).
        return pl.BlockSpec(shape, lambda i: (0, 0))

    flops = 2 * B * ((state_dim + action_dim) * H + H * H + H * out_dim)
    bytes_accessed = (
        state.size * state.dtype.itemsize
        + action.size * action.dtype.itemsize
        + sum(p.size * p.dtype.itemsize for p in kparams)
        + B * out_dim * 4)

    out = pl.pallas_call(
        _state_predictor_kernel,
        out_shape=jax.ShapeDtypeStruct((B, out_dim), jnp.float32),
        grid=(n_blocks,),
        in_specs=[
            pl.BlockSpec((TB, state_dim), lambda i: (i, 0)),
            pl.BlockSpec((TB, action_dim), lambda i: (i, 0)),
            resident(w1s.shape), resident(w1a.shape), resident(b1.shape),
            resident(w2.shape), resident(b2.shape),
            resident(w3.shape), resident(b3.shape),
        ],
        out_specs=pl.BlockSpec((TB, out_dim), lambda i: (i, 0)),
        compiler_params=pltpu.CompilerParams(
            dimension_semantics=("parallel",)),
        cost_estimate=pl.CostEstimate(flops=flops, transcendentals=0,
                                      bytes_accessed=bytes_accessed),
    )(state, action, w1s, w1a, b1, w2, b2, w3, b3)

    return out    # already [B, state_dim]; no wrapper-side slice pass


if __name__ == "__main__":
    # Small shapes consistent with the module (hidden_dim = module default 128).
    B = 8
    state_dim = 16
    action_dim = 8
    hidden_dim = 128

    key = jax.random.PRNGKey(0)
    k_state, k_action, k_params = jax.random.split(key, 3)

    state = jax.random.normal(k_state, (B, state_dim), jnp.float32)
    action = jax.random.normal(k_action, (B, action_dim), jnp.float32)

    params = init_params(k_params, state_dim, action_dim, hidden_dim)
    kparams = prepare_params(params, state_dim, action_dim)

    out = state_predictor_forward(state, action, kparams)
    out = jax.block_until_ready(out)
    assert out.shape == (B, state_dim)

    # Reference mirroring the kernel's bf16-matmul / f32-accumulate precision.
    w1, b1, w2, b2, w3, b3 = params
    x = jnp.concatenate([state, action], axis=-1)

    def mm(a, w):
        return jnp.dot(a.astype(jnp.bfloat16), w.astype(jnp.bfloat16),
                       preferred_element_type=jnp.float32)

    ref = jnp.maximum(mm(x, w1) + b1, 0.0)
    ref = jnp.maximum(mm(ref, w2) + b2, 0.0)
    ref = mm(ref, w3) + b3
    assert jnp.allclose(out, ref, atol=5e-3, rtol=5e-3), \
        float(jnp.max(jnp.abs(out - ref)))

    # Loose sanity check against the pure-f32 math (bf16 rounding tolerance).
    ref32 = jnp.maximum(x @ w1 + b1, 0.0)
    ref32 = jnp.maximum(ref32 @ w2 + b2, 0.0)
    ref32 = ref32 @ w3 + b3
    assert jnp.allclose(out, ref32, atol=5e-2, rtol=5e-2)

    print("KERNEL_OK")
</pallas_src>

<mosaic_0001>
module attributes {stable_mosaic.version = 11 : i64} {
  func.func @_state_predictor_kernel(%arg0: i32, %arg1: memref<8x16xf32, #tpu.memory_space<vmem>>, %arg2: memref<8x8xf32, #tpu.memory_space<vmem>>, %arg3: memref<16x128xbf16, #tpu.memory_space<vmem>>, %arg4: memref<8x128xbf16, #tpu.memory_space<vmem>>, %arg5: memref<1x128xf32, #tpu.memory_space<vmem>>, %arg6: memref<128x128xbf16, #tpu.memory_space<vmem>>, %arg7: memref<1x128xf32, #tpu.memory_space<vmem>>, %arg8: memref<128x16xbf16, #tpu.memory_space<vmem>>, %arg9: memref<1x16xf32, #tpu.memory_space<vmem>>, %arg10: memref<8x16xf32, #tpu.memory_space<vmem>>) attributes {dimension_semantics = [#tpu.dimension_semantics<parallel>], iteration_bounds = array<i64: 1>, scalar_prefetch = 0 : i64, scratch_operands = 0 : i64, tpu.core_type = #tpu.core_type<tc>, window_params = [{transform_indices = @transform_0, window_bounds = array<i64: 8, 16>}, {transform_indices = @transform_1, window_bounds = array<i64: 8, 8>}, {pipeline_mode = #tpu.pipeline_mode<synchronous>, transform_indices = @transform_2, window_bounds = array<i64: 16, 128>}, {pipeline_mode = #tpu.pipeline_mode<synchronous>, transform_indices = @transform_3, window_bounds = array<i64: 8, 128>}, {pipeline_mode = #tpu.pipeline_mode<synchronous>, transform_indices = @transform_4, window_bounds = array<i64: 1, 128>}, {pipeline_mode = #tpu.pipeline_mode<synchronous>, transform_indices = @transform_5, window_bounds = array<i64: 128, 128>}, {pipeline_mode = #tpu.pipeline_mode<synchronous>, transform_indices = @transform_6, window_bounds = array<i64: 1, 128>}, {pipeline_mode = #tpu.pipeline_mode<synchronous>, transform_indices = @transform_7, window_bounds = array<i64: 128, 16>}, {pipeline_mode = #tpu.pipeline_mode<synchronous>, transform_indices = @transform_8, window_bounds = array<i64: 1, 16>}, {transform_indices = @transform_9, window_bounds = array<i64: 8, 16>}]} {
    %c0 = arith.constant 0 : index
    %c0_0 = arith.constant 0 : index
    %0 = vector.load %arg1[%c0, %c0_0] : memref<8x16xf32, #tpu.memory_space<vmem>>, vector<8x16xf32>
    %1 = arith.truncf %0 : vector<8x16xf32> to vector<8x16xbf16>
    %c0_1 = arith.constant 0 : index
    %c0_2 = arith.constant 0 : index
    %2 = vector.load %arg2[%c0_1, %c0_2] : memref<8x8xf32, #tpu.memory_space<vmem>>, vector<8x8xf32>
    %3 = arith.truncf %2 : vector<8x8xf32> to vector<8x8xbf16>
    %c0_3 = arith.constant 0 : index
    %c0_4 = arith.constant 0 : index
    %4 = vector.load %arg3[%c0_3, %c0_4] : memref<16x128xbf16, #tpu.memory_space<vmem>>, vector<16x128xbf16>
    %cst = arith.constant dense<0.000000e+00> : vector<8x128xf32>
    %5 = tpu.matmul %1, %4, %cst {dimension_numbers = #tpu.dot_dimension_numbers<[1], [0], [0], [1], [0, 0, 1, 1], [], []>} : vector<8x16xbf16>, vector<16x128xbf16>, vector<8x128xf32> -> vector<8x128xf32>
    %c0_5 = arith.constant 0 : index
    %c0_6 = arith.constant 0 : index
    %6 = vector.load %arg4[%c0_5, %c0_6] : memref<8x128xbf16, #tpu.memory_space<vmem>>, vector<8x128xbf16>
    %cst_7 = arith.constant dense<0.000000e+00> : vector<8x128xf32>
    %7 = tpu.matmul %3, %6, %cst_7 {dimension_numbers = #tpu.dot_dimension_numbers<[1], [0], [0], [1], [0, 0, 1, 1], [], []>} : vector<8x8xbf16>, vector<8x128xbf16>, vector<8x128xf32> -> vector<8x128xf32>
    %8 = arith.addf %5, %7 : vector<8x128xf32>
    %c0_8 = arith.constant 0 : index
    %c0_9 = arith.constant 0 : index
    %9 = vector.load %arg5[%c0_8, %c0_9] : memref<1x128xf32, #tpu.memory_space<vmem>>, vector<1x128xf32>
    %10 = vector.broadcast %9 : vector<1x128xf32> to vector<8x128xf32>
    %11 = arith.addf %8, %10 : vector<8x128xf32>
    %cst_10 = arith.constant 0.000000e+00 : f32
    %12 = vector.broadcast %cst_10 : f32 to vector<8x128xf32>
    %13 = arith.maximumf %11, %12 : vector<8x128xf32>
    %14 = arith.truncf %13 : vector<8x128xf32> to vector<8x128xbf16>
    %c0_11 = arith.constant 0 : index
    %c0_12 = arith.constant 0 : index
    %15 = vector.load %arg6[%c0_11, %c0_12] : memref<128x128xbf16, #tpu.memory_space<vmem>>, vector<128x128xbf16>
    %cst_13 = arith.constant dense<0.000000e+00> : vector<8x128xf32>
    %16 = tpu.matmul %14, %15, %cst_13 {dimension_numbers = #tpu.dot_dimension_numbers<[1], [0], [0], [1], [0, 0, 1, 1], [], []>} : vector<8x128xbf16>, vector<128x128xbf16>, vector<8x128xf32> -> vector<8x128xf32>
    %c0_14 = arith.constant 0 : index
    %c0_15 = arith.constant 0 : index
    %17 = vector.load %arg7[%c0_14, %c0_15] : memref<1x128xf32, #tpu.memory_space<vmem>>, vector<1x128xf32>
    %18 = vector.broadcast %17 : vector<1x128xf32> to vector<8x128xf32>
    %19 = arith.addf %16, %18 : vector<8x128xf32>
    %cst_16 = arith.constant 0.000000e+00 : f32
    %20 = vector.broadcast %cst_16 : f32 to vector<8x128xf32>
    %21 = arith.maximumf %19, %20 : vector<8x128xf32>
    %22 = arith.truncf %21 : vector<8x128xf32> to vector<8x128xbf16>
    %c0_17 = arith.constant 0 : index
    %c0_18 = arith.constant 0 : index
    %23 = vector.load %arg8[%c0_17, %c0_18] : memref<128x16xbf16, #tpu.memory_space<vmem>>, vector<128x16xbf16>
    %cst_19 = arith.constant dense<0.000000e+00> : vector<8x16xf32>
    %24 = tpu.matmul %22, %23, %cst_19 {dimension_numbers = #tpu.dot_dimension_numbers<[1], [0], [0], [1], [0, 0, 1, 1], [], []>} : vector<8x128xbf16>, vector<128x16xbf16>, vector<8x16xf32> -> vector<8x16xf32>
    %c0_20 = arith.constant 0 : index
    %c0_21 = arith.constant 0 : index
    %25 = vector.load %arg9[%c0_20, %c0_21] : memref<1x16xf32, #tpu.memory_space<vmem>>, vector<1x16xf32>
    %26 = vector.broadcast %25 : vector<1x16xf32> to vector<8x16xf32>
    %27 = arith.addf %24, %26 : vector<8x16xf32>
    %c0_22 = arith.constant 0 : index
    %c0_23 = arith.constant 0 : index
    %28 = vector.load %arg10[%c0_22, %c0_23] : memref<8x16xf32, #tpu.memory_space<vmem>>, vector<8x16xf32>
    tpu.vector_store %arg10[%c0_22, %c0_23], %27 {strides = array<i32>} : memref<8x16xf32, #tpu.memory_space<vmem>>, vector<8x16xf32>,
    return
  }
  func.func @transform_0(%arg0: i32) -> (i32, i32) {
    %c0_i32 = arith.constant 0 : i32
    %c0_i32_0 = arith.constant 0 : i32
    return %arg0, %c0_i32 : i32, i32
  }
  func.func @transform_1(%arg0: i32) -> (i32, i32) {
    %c0_i32 = arith.constant 0 : i32
    %c0_i32_0 = arith.constant 0 : i32
    return %arg0, %c0_i32 : i32, i32
  }
  func.func @transform_2(%arg0: i32) -> (i32, i32) {
    %c0_i32 = arith.constant 0 : i32
    %c0_i32_0 = arith.constant 0 : i32
    %c0_i32_1 = arith.constant 0 : i32
    return %c0_i32, %c0_i32_0 : i32, i32
  }
  func.func @transform_3(%arg0: i32) -> (i32, i32) {
    %c0_i32 = arith.constant 0 : i32
    %c0_i32_0 = arith.constant 0 : i32
    %c0_i32_1 = arith.constant 0 : i32
    return %c0_i32, %c0_i32_0 : i32, i32
  }
  func.func @transform_4(%arg0: i32) -> (i32, i32) {
    %c0_i32 = arith.constant 0 : i32
    %c0_i32_0 = arith.constant 0 : i32
    %c0_i32_1 = arith.constant 0 : i32
    return %c0_i32, %c0_i32_0 : i32, i32
  }
  func.func @transform_5(%arg0: i32) -> (i32, i32) {
    %c0_i32 = arith.constant 0 : i32
    %c0_i32_0 = arith.constant 0 : i32
    %c0_i32_1 = arith.constant 0 : i32
    return %c0_i32, %c0_i32_0 : i32, i32
  }
  func.func @transform_6(%arg0: i32) -> (i32, i32) {
    %c0_i32 = arith.constant 0 : i32
    %c0_i32_0 = arith.constant 0 : i32
    %c0_i32_1 = arith.constant 0 : i32
    return %c0_i32, %c0_i32_0 : i32, i32
  }
  func.func @transform_7(%arg0: i32) -> (i32, i32) {
    %c0_i32 = arith.constant 0 : i32
    %c0_i32_0 = arith.constant 0 : i32
    %c0_i32_1 = arith.constant 0 : i32
    return %c0_i32, %c0_i32_0 : i32, i32
  }
  func.func @transform_8(%arg0: i32) -> (i32, i32) {
    %c0_i32 = arith.constant 0 : i32
    %c0_i32_0 = arith.constant 0 : i32
    %c0_i32_1 = arith.constant 0 : i32
    return %c0_i32, %c0_i32_0 : i32, i32
  }
  func.func @transform_9(%arg0: i32) -> (i32, i32) {
    %c0_i32 = arith.constant 0 : i32
    %c0_i32_0 = arith.constant 0 : i32
    return %arg0, %c0_i32 : i32, i32
  }
}

</mosaic_0001>

<bundles_post_ra>
// kernel: tpu_custom_call.1
= control target key start
LH: loop header
LB: loop body
LE: loop exit
PB: predicated region body
PF: predicated region fallthrough
CT: control target
= control target key end

     0   :  { %14 = vsyncpa [#allocation3], 0  ;;  %s744_s0 = inlined_call_operand.vmem [shape: f32[8,16], index: 0, kind: input, shape index: {}]   ;;  %s745_s1 = inlined_call_operand.vmem [shape: f32[8,8], index: 1, kind: input, shape index: {}]   ;;  %s746_s2 = inlined_call_operand.hbm [shape: bf16[16,128], index: 2, kind: input, shape index: {}]   ;;  %s747_s3 = inlined_call_operand.vmem [shape: bf16[8,128], index: 3, kind: input, shape index: {}]   ;;  %s748_s4 = inlined_call_operand.vmem [shape: f32[1,128], index: 4, kind: input, shape index: {}]   ;;  %s749_s5 = inlined_call_operand.vmem [shape: bf16[128,128], index: 5, kind: input, shape index: {}]   ;;  %s750_s6 = inlined_call_operand.vmem [shape: f32[1,128], index: 6, kind: input, shape index: {}]   ;;  %s751_s7 = inlined_call_operand.vmem [shape: bf16[128,16], index: 7, kind: input, shape index: {}]   ;;  %s752_s8 = inlined_call_operand.vmem [shape: f32[1,16], index: 8, kind: input, shape index: {}]   ;;  %s753_s9 = inlined_call_operand.hbm [shape: f32[8,16], index: 9, kind: output, shape index: {}]  }
   0x1   :  { %15 = vsyncpa [#allocation4], 0  ;;  %s570_s30 = smov [#allocation2]   ;;  %s522_s13 = scalar_lea.hbm %s746_s2, 128 }
   0x2   :  { %s25_s10 = sshll.u32 %s570_s30, 4  ;;  %p523_p0 = scmp.ne.s32.totalorder %s746_s2, %s522_s13  ;;  %s26_s10 = int_to_ptr.vmem [resolvable:$true] %s25_s10 }
   0x3   :  { %p526_p1 = scmp.lt.u32.totalorder %s522_s13, %s746_s2 }
   0x5   :  { %p528_p2 = pnand %p526_p1, %p523_p0 }
   0x7   :  { %531 = shalt.err (!%p528_p2)
}
   0x8   :  { %s532_s18 = scalar_lea.vmem %s26_s10, 128  ;;  %p537_p4 = scmp.lt.s32.totalorder %s26_s10, %s26_s10 }
   0x9   :  { %p533_p3 = scmp.ne.s32.totalorder %s26_s10, %s532_s18  ;;  %p538_p5 = scmp.lt.s32.totalorder %s532_s18, %s532_s18 }
   0xb   :  { %p539_p6 = por %p538_p5, %p537_p4 }
   0xd   :  { %p540_p7 = pnand %p539_p6, %p533_p3 }
   0xf   :  { %543 = shalt.err (!%p540_p7)
}
  0x10   :  { %s571_s19 = smov 64   ;;  %s572_s20 = smov 4  }
  0x11   :  { %31 = dma.hbm_to_vmem [thread:$0]  %s746_s2, 128, %s26_s10, [#allocation3], %s571_s19, %s571_s19, %s572_s20  }
  0x12   :  { %566 = dma.done.wait [#allocation3], 128  }
  0x13   :  { %567 = vsyncadd [#allocation3], 4294967168  ;;  %v573_v0 = vmov 0.0   ;;  %vm574_vm0 = vmmov 0   ;;  %vm59_vm1 = vcmask 1043456   ;;  %v505_v3 = vld [vmem:[#allocation2] sm:$0xff]  }
  0x14   :  { %447 = vmatprep.subr.bf16.mxu0 %v573_v0  ;;  %453 = vmatprep.subr.bf16.mxu1 %v573_v0  ;;  %v54_v1 = vld [vmem:[%s747_s3] sm:$0xf]  ;;  %vm55_vm2 = vcmask 64512   ;;  %vm109_vm3 = vcmask 130048   ;;  %v507_v9 = vld [vmem:[%s749_s5 + $0x8] sm:$0xff]   ;;  %v508_v10 = vld [vmem:[%s749_s5 + $0x10] sm:$0xff]  }
  0x15   :  { %449 = vmatprep.mubr.msk.bf16.mxu0 %vm574_vm0, %v573_v0  ;;  %455 = vmatprep.mubr.msk.bf16.mxu1 %vm574_vm0, %v573_v0  ;;  %v61_v2 = vsel %vm59_vm1, %v54_v1, 0  ;;  %v50_v4 = vld [vmem:[%s745_s1] sm:$0xff]  ;;  %v509_v11 = vld [vmem:[%s749_s5 + $0x18] sm:$0xff]   ;;  %v511_v13 = vld [vmem:[%s749_s5 + $0x28] sm:$0xff]   ;;  %s575_s15 = smov [#allocation5]  }
  0x16   :  { %v48_v5 = vld [vmem:[%s744_s0] sm:$0xff]  ;;  %448 = vmatpush3.bf16.msra.mxu0 %v61_v2  ;;  %v51_v6 = vpack.c.bf16 %v50_v4, %v50_v4  ;;  %454 = vmatpush3.bf16.msra.mxu1 %v505_v3  ;;  %v512_v14 = vld [vmem:[%s749_s5 + $0x30] sm:$0xff]   ;;  %v513_v15 = vld [vmem:[%s749_s5 + $0x38] sm:$0xff]   ;;  %s394_s16 = sshll.u32 %s575_s15, 4  ;;  %s395_s16 = int_to_ptr.vmem [resolvable:$true] %s394_s16 }
  0x17   :  { %v49_v7 = vpack.c.bf16 %v48_v5, %v48_v5  ;;  %v506_v8 = vld [vmem:[%s749_s5] sm:$0xff]   ;;  %459 = vmatprep.subr.bf16.mxu0 %v573_v0  ;;  %479 = vmatprep.subr.bf16.mxu1 %v573_v0  ;;  %v515_v17 = vld [vmem:[%s751_s7 + $0x8] sm:$0xff]   ;;  %v516_v18 = vld [vmem:[%s751_s7 + $0x10] sm:$0xff]   ;;  %p549_p9 = scmp.lt.s32.totalorder %s395_s16, %s395_s16 }
  0x18   :  { %v510_v12 = vld [vmem:[%s749_s5 + $0x20] sm:$0xff]   ;;  %v517_v19 = vld [vmem:[%s751_s7 + $0x18] sm:$0xff]   ;;  %v519_v21 = vld [vmem:[%s751_s7 + $0x28] sm:$0xff]  }
  0x19   :  { %450 = vmatmul.mubr.msk.bf16.vlgmr.msra.gmra.mrb[0].mxu0 %vm55_vm2, %v51_v6  ;;  %456 = vmatmul.mubr.msk.bf16.vlgmr.msra.gmra.mrb[0].mxu1 %vm109_vm3, %v49_v7  ;;  %v514_v16 = vld [vmem:[%s751_s7] sm:$0xff]   ;;  %v520_v35 = vld [vmem:[%s751_s7 + $0x30] sm:$0xff]   ;;  %v521_v36 = vld [vmem:[%s751_s7 + $0x38] sm:$0xff]  }
  0x1a   :  { %460 = vmatpush3.bf16.msra.mxu0 %v506_v8  ;;  %475 = vmatprep.mubr.msk.bf16.mxu0 %vm574_vm0, %v573_v0  ;;  %v518_v20 = vld [vmem:[%s751_s7 + $0x20] sm:$0xff]  }
  0x1b   :  { %461 = vmatprep.subr.bf16.mxu0 %v573_v0  ;;  %495 = vmatprep.mubr.msk.bf16.mxu1 %vm574_vm0, %v573_v0  ;;  %v406_v25 = vld [vmem:[%s748_s4] ss:$0 sm:$0xff] }
  0x1c   :  { %480 = vmatpush3.bf16.msra.mxu1 %v514_v16  ;;  %v407_v37 = vld [vmem:[%s750_s6] ss:$0 sm:$0xff]  ;;  %s544_s6 = scalar_lea.vmem %s395_s16, 128 }
  0x1d   :  { %481 = vmatprep.subr.bf16.mxu1 %v573_v0  ;;  %v416_v45 = vld [vmem:[%s752_s8] ss:$0 sm:$0xff]  ;;  %p545_p8 = scmp.ne.s32.totalorder %s395_s16, %s544_s6  ;;  %p550_p10 = scmp.lt.s32.totalorder %s544_s6, %s544_s6 }
  0x1e   :  { %462 = vmatpush3.bf16.msra.mxu0 %v507_v9 }
  0x1f   :  { %463 = vmatprep.subr.bf16.mxu0 %v573_v0  ;;  %p551_p11 = por %p550_p10, %p549_p9 }
  0x20   :  { %482 = vmatpush3.bf16.msra.mxu1 %v515_v17 }
  0x21   :  { %483 = vmatprep.subr.bf16.mxu1 %v573_v0  ;;  %p552_p12 = pnand %p551_p11, %p545_p8 }
  0x22   :  { %464 = vmatpush3.bf16.msra.mxu0 %v508_v10 }
  0x23   :  { %465 = vmatprep.subr.bf16.mxu0 %v573_v0 }
  0x24   :  { %484 = vmatpush3.bf16.msra.mxu1 %v516_v18 }
  0x25   :  { %485 = vmatprep.subr.bf16.mxu1 %v573_v0 }
  0x26   :  { %466 = vmatpush3.bf16.msra.mxu0 %v509_v11 }
  0x27   :  { %467 = vmatprep.subr.bf16.mxu0 %v573_v0 }
  0x28   :  { %486 = vmatpush3.bf16.msra.mxu1 %v517_v19 }
  0x29   :  { %487 = vmatprep.subr.bf16.mxu1 %v573_v0 }
  0x2a   :  { %468 = vmatpush3.bf16.msra.mxu0 %v510_v12 }
  0x2b   :  { %469 = vmatprep.subr.bf16.mxu0 %v573_v0 }
  0x2c   :  { %488 = vmatpush3.bf16.msra.mxu1 %v518_v20 }
  0x2d   :  { %489 = vmatprep.subr.bf16.mxu1 %v573_v0 }
  0x2e   :  { %470 = vmatpush3.bf16.msra.mxu0 %v511_v13 }
  0x2f   :  { %471 = vmatprep.subr.bf16.mxu0 %v573_v0 }
  0x30   :  { %490 = vmatpush3.bf16.msra.mxu1 %v519_v21 }
  0x31   :  { %491 = vmatprep.subr.bf16.mxu1 %v573_v0 }
  0x32   :  { %472 = vmatpush3.bf16.msra.mxu0 %v512_v14 }
  0x33   :  { %473 = vmatprep.subr.bf16.mxu0 %v573_v0 }
  0x34   :  { %492 = vmatpush3.bf16.msra.mxu1 %v520_v35 }
  0x35   :  { %493 = vmatprep.subr.bf16.mxu1 %v573_v0 }
  0x36   :  { %474 = vmatpush3.bf16.msra.mxu0 %v513_v15 }
  0x38   :  { %494 = vmatpush3.bf16.msra.mxu1 %v521_v36 }
  0xec   :  { %v97_v22 = vpop.f32.mrb[0].mxu0  ;;  %v147_v24 = vpop.f32.mrb[0].mxu1 }
  0xed   :  { %v451_v23 = vpop.f32.mrb[1].mxu0  ;;  %v148_v26 = vadd.f32 %v147_v24, %v97_v22  ;;  %v457_v28 = vpop.f32.mrb[1].mxu1 }
  0xee   :  { %v100_v27 = vpop.f32.mrb[2].mxu0  ;;  %v150_v30 = vpop.f32.mrb[2].mxu1 }
  0xef   :  { %v452_v29 = vpop.f32.mrb[3].mxu0  ;;  %v160_v31 = vadd.f32 %v406_v25, %v148_v26  ;;  %v458_v32 = vpop.f32.mrb[3].mxu1 }
  0xf1   :  { %v161_v33 = vmax.f32 %v160_v31, 0.0 }
  0xf3   :  { %v162_v34 = vpack.c.bf16 %v161_v33, %v161_v33 }
  0xf5   :  { %476 = vmatmul.mubr.bf16.vlgmr.msra.gmra.mrb[4].mxu0 %v162_v34 }
 0x1c8   :  { %v268_v38 = vpop.f32.mrb[4].mxu0 }
 0x1c9   :  { %v269_v39 = vadd.f32 %v407_v37, %v268_v38  ;;  %v477_v40 = vpop.f32.mrb[5].mxu0 }
 0x1ca   :  { %v271_v41 = vpop.f32.mrb[6].mxu0 }
 0x1cb   :  { %v274_v42 = vmax.f32 %v269_v39, 0.0  ;;  %v478_v43 = vpop.f32.mrb[7].mxu0 }
 0x1cd   :  { %v275_v44 = vpack.c.bf16 %v274_v42, %v274_v42 }
 0x1cf   :  { %496 = vmatmul.mubr.bf16.vlgmr.msra.gmra.mrb[4].mxu1 %v275_v44 }
 0x2a2   :  { %v381_v46 = vpop.f32.mrb[4].mxu1 }
 0x2a3   :  { %v382_v47 = vadd.f32 %v416_v45, %v381_v46  ;;  %v497_v48 = vpop.f32.mrb[5].mxu1 }
 0x2a4   :  { %v384_v49 = vpop.f32.mrb[6].mxu1 }
 0x2a5   :  { %387 = vst.msk [vmem:[#allocation5] sm:$0xff] %vm109_vm3, %v382_v47  ;;  %v498_v50 = vpop.f32.mrb[7].mxu1 }
 0x2a6   :  { %555 = shalt.err (!%p552_p12)
}
 0x2a7   :  { %s556_s8 = scalar_lea.hbm %s753_s9, 128 }
 0x2a8   :  { %p557_p13 = scmp.ne.s32.totalorder %s753_s9, %s556_s8  ;;  %p560_p0 = scmp.lt.u32.totalorder %s556_s8, %s753_s9 }
 0x2aa   :  { %p562_p1 = pnand %p560_p0, %p557_p13 }
 0x2ac   :  { %565 = shalt.err (!%p562_p1)
}
 0x2ad   :  { %397 = dma.vmem_to_hbm [thread:$0]  %s395_s16, 128, %s753_s9, [#allocation4]  }
 0x2ae   :  { %568 = dma.done.wait [#allocation4], 128  }
 0x2af   :  { %569 = vsyncadd [#allocation4], 4294967168 }
 0x2b0   :  { %401 = vsyncpa [#allocation3], 1 }
 0x2b1   :  { %402 = vsyncpa [#allocation4], 1 }

</bundles_post_ra>
